<compile_context>
chip_gen: v7x
topology: tpu7x:2x2x1
jax: 0.10.0
libtpu: 0.0.40
codegen_flags: <defaults>
</compile_context>

<pallas_src>
import jax
import jax.numpy as jnp
from jax.experimental import pallas as pl
from jax.experimental.pallas import tpu as pltpu


def _round_up(x, m):
    return (x + m - 1) // m * m


_VMEM_DYNAMIC_BUDGET = 24 * (1 << 20)   # budget for row-scaled buffers (all gens)
_VMEM_LIMIT_CAP = 48 * (1 << 20)        # stay under v7x's 64 MiB physical VMEM


def _pick_tile_rows(num_edge, dim_in, dop, act_itemsize, target):
    """Largest row tile that fits the VMEM budget (big tiles are the #1 lever;
    v7x's 64 MiB physical / 32 MiB default-scoped VMEM is the binding case)."""
    # Grid-invariant weights/biases are still double-buffered by the pipeline.
    fixed = 2 * 4 * (3 * dim_in * dim_in + dop * dim_in + 2 * dim_in + dop)
    # Per row: double-buffered src+dst input blocks, double-buffered output
    # block, plus f32 live intermediates (src/dst values, h1, h2, ot).
    per_row = (2 * 2 * dim_in * act_itemsize
               + 2 * dop * act_itemsize
               + 4 * (4 * dim_in + dop))
    cap = max(8, (_VMEM_DYNAMIC_BUDGET - fixed) // per_row)
    max_tile = min(target, cap)
    if num_edge <= max_tile:
        # Single block covering the whole row axis: full-extent dims need no
        # (8,128) alignment, and the lane-dense output block equals num_edge.
        tile_rows = num_edge
    else:
        # Multi-block: tile must be a multiple of 128 so the lane-dense output
        # block (..., tile_rows) satisfies the last-dim constraint.
        tile_rows = max(128, (max_tile // 128) * 128)
    footprint = fixed + per_row * tile_rows
    return tile_rows, footprint


def _edge_mlp_kernel(src_ref, dst_ref, w1s_ref, w1d_ref, b1_ref,
                     w2_ref, b2_ref, w3t_ref, b3t_ref, o_ref):
    """Fused 3-layer MLP on one (row-tile, segment) of edge features.

    Layer 1 consumes concat(src, dst) implicitly via the split W1 halves.
    Layer 3 is computed transposed so the output is lane-dense.
    """
    src = src_ref[...]          # (T, d)
    dst = dst_ref[0]            # (T, d)  -- leading segment dim squeezed

    h1 = jnp.dot(src, w1s_ref[...], preferred_element_type=jnp.float32)
    h1 = h1 + jnp.dot(dst, w1d_ref[...], preferred_element_type=jnp.float32)
    h1 = jnp.maximum(h1 + b1_ref[...], 0.0)

    h2 = jnp.dot(h1, w2_ref[...], preferred_element_type=jnp.float32)
    h2 = jnp.maximum(h2 + b2_ref[...], 0.0)

    # (dop, d) x (T, d)^T -> (dop, T): contract the feature dim of both
    # (same q @ k.T pattern as flash attention), lane-dense result.
    ot = jax.lax.dot_general(w3t_ref[...], h2,
                             (((1,), (1,)), ((), ())),
                             preferred_element_type=jnp.float32)
    ot = ot + b3t_ref[...]                      # (dop, 1) broadcasts over lanes
    o_ref[0] = ot.astype(o_ref.dtype)


def edge_predictor_forward(h, params, neg_samples=1, tile_rows_target=4096):
    """Matches EdgePredictor.forward (eval mode) for 2-D h of shape (N, dim_in)."""
    num_segments = neg_samples + 1
    # Floor division matches the torch reference (callers pass exact multiples).
    num_edge = h.shape[0] // (neg_samples + 2)
    dim_in = h.shape[1]
    dim_out = params["w3"].shape[1]
    dop = _round_up(dim_out, 8)     # pad out-dim -> aligned matmul M / full stores

    h_src = h[:num_edge]
    # pos_dst followed by all neg_dst segments: one contiguous slice viewed as
    # (segments, num_edge, d); no concat / tile / pad copies are materialized.
    h_dst = h[num_edge:(neg_samples + 2) * num_edge].reshape(
        num_segments, num_edge, dim_in)

    w1_src = params["w1"][:dim_in]      # multiplies the src half of concat
    w1_dst = params["w1"][dim_in:]      # multiplies the dst half of concat
    b1, w2, b2 = params["b1"], params["w2"], params["b2"]
    w3t = jnp.pad(params["w3"].T, ((0, dop - dim_out), (0, 0)))       # (dop, d)
    b3t = jnp.pad(params["b3"].reshape(dim_out, 1),
                  ((0, dop - dim_out), (0, 0)))                       # (dop, 1)

    act_itemsize = h.dtype.itemsize
    tile_rows, footprint = _pick_tile_rows(num_edge, dim_in, dop,
                                           act_itemsize, tile_rows_target)
    grid = (pl.cdiv(num_edge, tile_rows), num_segments)
    inv = lambda i, s: (0, 0)           # grid-invariant weights / biases

    total_rows = num_segments * num_edge
    flops = 2 * total_rows * dim_in * (3 * dim_in + dim_out)
    bytes_accessed = (act_itemsize * (num_edge * dim_in                  # src
                                      + total_rows * dim_in              # dst
                                      + num_segments * dop * num_edge)   # out
                      + 4 * (3 * dim_in * dim_in + dop * dim_in
                             + 2 * dim_in + dop))                        # weights

    vmem_limit = int(min(_VMEM_LIMIT_CAP, max(32 * (1 << 20), 2 * footprint)))

    out = pl.pallas_call(
        _edge_mlp_kernel,
        out_shape=jax.ShapeDtypeStruct((num_segments, dop, num_edge), h.dtype),
        grid=grid,
        in_specs=[
            pl.BlockSpec((tile_rows, dim_in), lambda i, s: (i, 0)),        # src
            pl.BlockSpec((1, tile_rows, dim_in), lambda i, s: (s, i, 0)),  # dst
            pl.BlockSpec((dim_in, dim_in), inv),                           # W1[:d]
            pl.BlockSpec((dim_in, dim_in), inv),                           # W1[d:]
            pl.BlockSpec((1, dim_in), inv),                                # b1
            pl.BlockSpec((dim_in, dim_in), inv),                           # W2
            pl.BlockSpec((1, dim_in), inv),                                # b2
            pl.BlockSpec((dop, dim_in), inv),                              # W3^T
            pl.BlockSpec((dop, 1), inv),                                   # b3^T
        ],
        out_specs=pl.BlockSpec((1, dop, tile_rows), lambda i, s: (s, 0, i)),
        compiler_params=pltpu.CompilerParams(
            dimension_semantics=("parallel", "parallel"),
            vmem_limit_bytes=vmem_limit),
        cost_estimate=pl.CostEstimate(flops=flops, transcendentals=0,
                                      bytes_accessed=bytes_accessed),
    )(h_src, h_dst, w1_src, w1_dst, b1, w2, b2, w3t, b3t)

    pos = out[0, :dim_out, :].T                                  # (E, dim_out)
    neg = jnp.transpose(out[1:, :dim_out, :], (0, 2, 1)).reshape(
        neg_samples * num_edge, dim_out)
    return pos, neg


def init_edge_predictor_params(key, dim_in, dim_out=1):
    """Deterministic init mimicking torch.nn.Linear (uniform +-1/sqrt(fan_in))."""
    ks = jax.random.split(key, 6)

    def linear(kw, kb, fan_in, fan_out):
        bound = 1.0 / jnp.sqrt(jnp.float32(fan_in))
        w = jax.random.uniform(kw, (fan_in, fan_out), jnp.float32, -bound, bound)
        b = jax.random.uniform(kb, (1, fan_out), jnp.float32, -bound, bound)
        return w, b

    w1, b1 = linear(ks[0], ks[1], 2 * dim_in, dim_in)
    w2, b2 = linear(ks[2], ks[3], dim_in, dim_in)
    w3, b3 = linear(ks[4], ks[5], dim_in, dim_out)
    return dict(w1=w1, b1=b1, w2=w2, b2=b2, w3=w3, b3=b3)


def _reference_forward(h, params, neg_samples=1):
    """Pure-JAX reference (matches the torch forward, eval mode)."""
    def mlp(x):
        h1 = jnp.maximum(x @ params["w1"] + params["b1"], 0.0)
        h2 = jnp.maximum(h1 @ params["w2"] + params["b2"], 0.0)
        return h2 @ params["w3"] + params["b3"]

    num_edge = h.shape[0] // (neg_samples + 2)
    h_src = h[:num_edge]
    h_pos_dst = h[num_edge:2 * num_edge]
    h_neg_dst = h[2 * num_edge:]
    pos = jnp.concatenate([h_src, h_pos_dst], axis=-1)
    neg = jnp.concatenate([jnp.tile(h_src, (neg_samples, 1)), h_neg_dst],
                          axis=-1)
    return mlp(pos), mlp(neg)


if __name__ == "__main__":
    dim_in = 32
    dim_out = 1

    key = jax.random.PRNGKey(0)
    k_h, k_p, k_h2, k_h3 = jax.random.split(key, 4)
    params = init_edge_predictor_params(k_p, dim_in, dim_out)

    # Case 1: small even shapes (src + pos_dst + neg_dst), single row block.
    neg_samples = 1
    num_edge = 8
    h = jax.random.normal(k_h, (num_edge * (neg_samples + 2), dim_in),
                          jnp.float32)
    pos_out, neg_out = edge_predictor_forward(h, params,
                                              neg_samples=neg_samples)
    jax.block_until_ready((pos_out, neg_out))
    ref_pos, ref_neg = _reference_forward(h, params, neg_samples=neg_samples)
    assert pos_out.shape == (num_edge, dim_out)
    assert neg_out.shape == (num_edge * neg_samples, dim_out)
    assert jnp.allclose(pos_out, ref_pos, atol=1e-5, rtol=1e-5)
    assert jnp.allclose(neg_out, ref_neg, atol=1e-5, rtol=1e-5)

    # Case 2: ragged edge count, multiple negative samples (single full-extent
    # block with num_edge not a multiple of 8 -> exercises full-dim blocks).
    neg_samples2 = 2
    num_edge2 = 10
    h2 = jax.random.normal(k_h2, (num_edge2 * (neg_samples2 + 2), dim_in),
                           jnp.float32)
    pos2, neg2 = edge_predictor_forward(h2, params, neg_samples=neg_samples2)
    jax.block_until_ready((pos2, neg2))
    ref_pos2, ref_neg2 = _reference_forward(h2, params,
                                            neg_samples=neg_samples2)
    assert pos2.shape == (num_edge2, dim_out)
    assert neg2.shape == (num_edge2 * neg_samples2, dim_out)
    assert jnp.allclose(pos2, ref_pos2, atol=1e-5, rtol=1e-5)
    assert jnp.allclose(neg2, ref_neg2, atol=1e-5, rtol=1e-5)

    # Case 3: force a small tile so there are multiple row blocks with a
    # partial tail block (exercises the no-pad / partial-block path).
    neg_samples3 = 1
    num_edge3 = 200
    h3 = jax.random.normal(k_h3, (num_edge3 * (neg_samples3 + 2), dim_in),
                           jnp.float32)
    pos3, neg3 = edge_predictor_forward(h3, params, neg_samples=neg_samples3,
                                        tile_rows_target=128)
    jax.block_until_ready((pos3, neg3))
    ref_pos3, ref_neg3 = _reference_forward(h3, params,
                                            neg_samples=neg_samples3)
    assert pos3.shape == (num_edge3, dim_out)
    assert neg3.shape == (num_edge3 * neg_samples3, dim_out)
    assert jnp.allclose(pos3, ref_pos3, atol=1e-5, rtol=1e-5)
    assert jnp.allclose(neg3, ref_neg3, atol=1e-5, rtol=1e-5)

    print("KERNEL_OK")
</pallas_src>

<mosaic_0001>
module attributes {stable_mosaic.version = 11 : i64} {
  func.func @_edge_mlp_kernel(%arg0: i32, %arg1: i32, %arg2: memref<8x32xf32, #tpu.memory_space<vmem>>, %arg3: memref<1x8x32xf32, #tpu.memory_space<vmem>>, %arg4: memref<32x32xf32, #tpu.memory_space<vmem>>, %arg5: memref<32x32xf32, #tpu.memory_space<vmem>>, %arg6: memref<1x32xf32, #tpu.memory_space<vmem>>, %arg7: memref<32x32xf32, #tpu.memory_space<vmem>>, %arg8: memref<1x32xf32, #tpu.memory_space<vmem>>, %arg9: memref<8x32xf32, #tpu.memory_space<vmem>>, %arg10: memref<8x1xf32, #tpu.memory_space<vmem>>, %arg11: memref<1x8x8xf32, #tpu.memory_space<vmem>>) attributes {dimension_semantics = [#tpu.dimension_semantics<parallel>, #tpu.dimension_semantics<parallel>], iteration_bounds = array<i64: 1, 2>, scalar_prefetch = 0 : i64, scratch_operands = 0 : i64, tpu.core_type = #tpu.core_type<tc>, window_params = [{transform_indices = @transform_0, window_bounds = array<i64: 8, 32>}, {transform_indices = @transform_1, window_bounds = array<i64: 1, 8, 32>}, {pipeline_mode = #tpu.pipeline_mode<synchronous>, transform_indices = @transform_2, window_bounds = array<i64: 32, 32>}, {pipeline_mode = #tpu.pipeline_mode<synchronous>, transform_indices = @transform_3, window_bounds = array<i64: 32, 32>}, {pipeline_mode = #tpu.pipeline_mode<synchronous>, transform_indices = @transform_4, window_bounds = array<i64: 1, 32>}, {pipeline_mode = #tpu.pipeline_mode<synchronous>, transform_indices = @transform_5, window_bounds = array<i64: 32, 32>}, {pipeline_mode = #tpu.pipeline_mode<synchronous>, transform_indices = @transform_6, window_bounds = array<i64: 1, 32>}, {pipeline_mode = #tpu.pipeline_mode<synchronous>, transform_indices = @transform_7, window_bounds = array<i64: 8, 32>}, {pipeline_mode = #tpu.pipeline_mode<synchronous>, transform_indices = @transform_8, window_bounds = array<i64: 8, 1>}, {transform_indices = @transform_9, window_bounds = array<i64: 1, 8, 8>}]} {
    %c0 = arith.constant 0 : index
    %c0_0 = arith.constant 0 : index
    %0 = vector.load %arg2[%c0, %c0_0] : memref<8x32xf32, #tpu.memory_space<vmem>>, vector<8x32xf32>
    %c0_1 = arith.constant 0 : index
    %c0_2 = arith.constant 0 : index
    %c0_3 = arith.constant 0 : index
    %1 = vector.load %arg3[%c0_1, %c0_2, %c0_3] : memref<1x8x32xf32, #tpu.memory_space<vmem>>, vector<1x8x32xf32>
    %2 = vector.shape_cast %1 : vector<1x8x32xf32> to vector<8x32xf32>
    %c0_4 = arith.constant 0 : index
    %c0_5 = arith.constant 0 : index
    %3 = vector.load %arg4[%c0_4, %c0_5] : memref<32x32xf32, #tpu.memory_space<vmem>>, vector<32x32xf32>
    %cst = arith.constant dense<0.000000e+00> : vector<8x32xf32>
    %4 = tpu.matmul %0, %3, %cst {dimension_numbers = #tpu.dot_dimension_numbers<[1], [0], [0], [1], [0, 0, 1, 1], [], []>} : vector<8x32xf32>, vector<32x32xf32>, vector<8x32xf32> -> vector<8x32xf32>
    %c0_6 = arith.constant 0 : index
    %c0_7 = arith.constant 0 : index
    %5 = vector.load %arg5[%c0_6, %c0_7] : memref<32x32xf32, #tpu.memory_space<vmem>>, vector<32x32xf32>
    %cst_8 = arith.constant dense<0.000000e+00> : vector<8x32xf32>
    %6 = tpu.matmul %2, %5, %cst_8 {dimension_numbers = #tpu.dot_dimension_numbers<[1], [0], [0], [1], [0, 0, 1, 1], [], []>} : vector<8x32xf32>, vector<32x32xf32>, vector<8x32xf32> -> vector<8x32xf32>
    %7 = arith.addf %4, %6 : vector<8x32xf32>
    %c0_9 = arith.constant 0 : index
    %c0_10 = arith.constant 0 : index
    %8 = vector.load %arg6[%c0_9, %c0_10] : memref<1x32xf32, #tpu.memory_space<vmem>>, vector<1x32xf32>
    %9 = vector.broadcast %8 : vector<1x32xf32> to vector<8x32xf32>
    %10 = arith.addf %7, %9 : vector<8x32xf32>
    %cst_11 = arith.constant 0.000000e+00 : f32
    %11 = vector.broadcast %cst_11 : f32 to vector<8x32xf32>
    %12 = arith.maximumf %10, %11 : vector<8x32xf32>
    %c0_12 = arith.constant 0 : index
    %c0_13 = arith.constant 0 : index
    %13 = vector.load %arg7[%c0_12, %c0_13] : memref<32x32xf32, #tpu.memory_space<vmem>>, vector<32x32xf32>
    %cst_14 = arith.constant dense<0.000000e+00> : vector<8x32xf32>
    %14 = tpu.matmul %12, %13, %cst_14 {dimension_numbers = #tpu.dot_dimension_numbers<[1], [0], [0], [1], [0, 0, 1, 1], [], []>} : vector<8x32xf32>, vector<32x32xf32>, vector<8x32xf32> -> vector<8x32xf32>
    %c0_15 = arith.constant 0 : index
    %c0_16 = arith.constant 0 : index
    %15 = vector.load %arg8[%c0_15, %c0_16] : memref<1x32xf32, #tpu.memory_space<vmem>>, vector<1x32xf32>
    %16 = vector.broadcast %15 : vector<1x32xf32> to vector<8x32xf32>
    %17 = arith.addf %14, %16 : vector<8x32xf32>
    %cst_17 = arith.constant 0.000000e+00 : f32
    %18 = vector.broadcast %cst_17 : f32 to vector<8x32xf32>
    %19 = arith.maximumf %17, %18 : vector<8x32xf32>
    %c0_18 = arith.constant 0 : index
    %c0_19 = arith.constant 0 : index
    %20 = vector.load %arg9[%c0_18, %c0_19] : memref<8x32xf32, #tpu.memory_space<vmem>>, vector<8x32xf32>
    %cst_20 = arith.constant dense<0.000000e+00> : vector<8x8xf32>
    %21 = tpu.matmul %20, %19, %cst_20 {dimension_numbers = #tpu.dot_dimension_numbers<[1], [1], [0], [0], [0, 0, 1, 0], [], []>} : vector<8x32xf32>, vector<8x32xf32>, vector<8x8xf32> -> vector<8x8xf32>
    %c0_21 = arith.constant 0 : index
    %c0_22 = arith.constant 0 : index
    %22 = vector.load %arg10[%c0_21, %c0_22] : memref<8x1xf32, #tpu.memory_space<vmem>>, vector<8x1xf32>
    %23 = vector.broadcast %22 : vector<8x1xf32> to vector<8x8xf32>
    %24 = arith.addf %21, %23 : vector<8x8xf32>
    %c0_23 = arith.constant 0 : index
    %c0_24 = arith.constant 0 : index
    %c0_25 = arith.constant 0 : index
    %25 = vector.load %arg11[%c0_23, %c0_24, %c0_25] : memref<1x8x8xf32, #tpu.memory_space<vmem>>, vector<1x8x8xf32>
    %26 = vector.shape_cast %25 : vector<1x8x8xf32> to vector<8x8xf32>
    %27 = vector.shape_cast %24 : vector<8x8xf32> to vector<1x8x8xf32>
    tpu.vector_store %arg11[%c0_23, %c0_24, %c0_25], %27 {strides = array<i32>} : memref<1x8x8xf32, #tpu.memory_space<vmem>>, vector<1x8x8xf32>,
    return
  }
  func.func @transform_0(%arg0: i32, %arg1: i32) -> (i32, i32) {
    %c0_i32 = arith.constant 0 : i32
    %c0_i32_0 = arith.constant 0 : i32
    return %arg0, %c0_i32 : i32, i32
  }
  func.func @transform_1(%arg0: i32, %arg1: i32) -> (i32, i32, i32) {
    %c0_i32 = arith.constant 0 : i32
    %c0_i32_0 = arith.constant 0 : i32
    return %arg1, %arg0, %c0_i32 : i32, i32, i32
  }
  func.func @transform_2(%arg0: i32, %arg1: i32) -> (i32, i32) {
    %c0_i32 = arith.constant 0 : i32
    %c0_i32_0 = arith.constant 0 : i32
    %c0_i32_1 = arith.constant 0 : i32
    return %c0_i32, %c0_i32_0 : i32, i32
  }
  func.func @transform_3(%arg0: i32, %arg1: i32) -> (i32, i32) {
    %c0_i32 = arith.constant 0 : i32
    %c0_i32_0 = arith.constant 0 : i32
    %c0_i32_1 = arith.constant 0 : i32
    return %c0_i32, %c0_i32_0 : i32, i32
  }
  func.func @transform_4(%arg0: i32, %arg1: i32) -> (i32, i32) {
    %c0_i32 = arith.constant 0 : i32
    %c0_i32_0 = arith.constant 0 : i32
    %c0_i32_1 = arith.constant 0 : i32
    return %c0_i32, %c0_i32_0 : i32, i32
  }
  func.func @transform_5(%arg0: i32, %arg1: i32) -> (i32, i32) {
    %c0_i32 = arith.constant 0 : i32
    %c0_i32_0 = arith.constant 0 : i32
    %c0_i32_1 = arith.constant 0 : i32
    return %c0_i32, %c0_i32_0 : i32, i32
  }
  func.func @transform_6(%arg0: i32, %arg1: i32) -> (i32, i32) {
    %c0_i32 = arith.constant 0 : i32
    %c0_i32_0 = arith.constant 0 : i32
    %c0_i32_1 = arith.constant 0 : i32
    return %c0_i32, %c0_i32_0 : i32, i32
  }
  func.func @transform_7(%arg0: i32, %arg1: i32) -> (i32, i32) {
    %c0_i32 = arith.constant 0 : i32
    %c0_i32_0 = arith.constant 0 : i32
    %c0_i32_1 = arith.constant 0 : i32
    return %c0_i32, %c0_i32_0 : i32, i32
  }
  func.func @transform_8(%arg0: i32, %arg1: i32) -> (i32, i32) {
    %c0_i32 = arith.constant 0 : i32
    %c0_i32_0 = arith.constant 0 : i32
    %c0_i32_1 = arith.constant 0 : i32
    return %c0_i32, %c0_i32_0 : i32, i32
  }
  func.func @transform_9(%arg0: i32, %arg1: i32) -> (i32, i32, i32) {
    %c0_i32 = arith.constant 0 : i32
    %c0_i32_0 = arith.constant 0 : i32
    return %arg1, %c0_i32, %arg0 : i32, i32, i32
  }
}

</mosaic_0001>

<bundles_post_ra>
// kernel: tpu_custom_call.1
= control target key start
LH: loop header
LB: loop body
LE: loop exit
PB: predicated region body
PF: predicated region fallthrough
CT: control target
= control target key end

     0   :  { %s1683_s0 = inlined_call_operand.vmem [shape: f32[8,32], index: 0, kind: input, shape index: {}]   ;;  %s1684_s1 = inlined_call_operand.hbm [shape: f32[2,8,32], index: 1, kind: input, shape index: {}]   ;;  %s1685_s2 = inlined_call_operand.hbm [shape: f32[32,32], index: 2, kind: input, shape index: {}]   ;;  %s1686_s3 = inlined_call_operand.hbm [shape: f32[32,32], index: 3, kind: input, shape index: {}]   ;;  %s1687_s4 = inlined_call_operand.vmem [shape: f32[1,32], index: 4, kind: input, shape index: {}]   ;;  %s1688_s5 = inlined_call_operand.hbm [shape: f32[32,32], index: 5, kind: input, shape index: {}]   ;;  %s1689_s6 = inlined_call_operand.vmem [shape: f32[1,32], index: 6, kind: input, shape index: {}]   ;;  %s1690_s7 = inlined_call_operand.vmem [shape: f32[8,32], index: 7, kind: input, shape index: {}]   ;;  %s1691_s8 = inlined_call_operand.vmem [shape: f32[8,1], index: 8, kind: input, shape index: {}]   ;;  %s1692_s9 = inlined_call_operand.hbm [shape: f32[2,8,8], index: 9, kind: output, shape index: {}]  }
   0x1   :  { %1700 = sst [smem:[#allocation17_spill]] %s1689_s6 }
   0x2   :  { %1701 = sst [smem:[#allocation18_spill]] %s1690_s7 }
   0x3   :  { %1702 = sst [smem:[#allocation19_spill]] %s1691_s8 }
   0x4   :  { %1703 = sst [smem:[#allocation20_spill]] %s1692_s9 }
   0x5   :  { %14 = vsyncpa [#allocation3], 0 }
   0x6   :  { %16 = vsyncpa [#allocation3 + $0x1], 0 }
   0x7   :  { %17 = vsyncpa [#allocation6], 0 }
   0x8   :  { %18 = vsyncpa [#allocation9], 0 }
   0x9   :  { %19 = vsyncpa [#allocation4], 0 }
   0xa   :  { %21 = vsyncpa [#allocation4 + $0x1], 0  ;;  %s1368_s30 = smov 0   ;;  %s1370_s10 = smov 0  }
   0xb   :  { %s1372_s11 = smov 0   ;;  %s1374_s12 = smov 0  }
   0xc   :  { %s1376_s13 = smov 0   ;;  %s1378_s14 = smov 0  }
   0xd LB: > { %1704 = sst [smem:[#allocation15_spill]] %s1285_s30  ;;  %s901_s15 = sadd.s32 4294967295, %s1305_s14   ;;  %s1305_s14 = sphi %s1378_s14, %s27_s14   ;;  %s1301_s13 = sphi %s1376_s13, %s1731_s13   ;;  %s1297_s12 = sphi %s1374_s12, %s1730_s12   ;;  %s1293_s11 = sphi %s1372_s11, %s1729_s11   ;;  %s1289_s10 = sphi %s1370_s10, %s1728_s10   ;;  %s1285_s30 = sphi %s1368_s30, %s1727_s30  }
   0xe   : > { %s902_s16 = sadd.s32 4294967294, %s1305_s14   ;;  %p87_p0 = scmp.ne.s32.totalorder %s1289_s10, %s1285_s30 }
   0xf   : > { %p1402_p1 = scmp.eq.s32.totalorder %s901_s15, 0  ;;  %p1406_p2 = scmp.eq.s32.totalorder %s901_s15, 1 }
  0x10   : > { %p266_p3 = scmp.eq.s32.totalorder %s902_s16, 1  ;;  %p903_p5 = scmp.ge.s32.totalorder %s1305_s14, 1 }
  0x11   : > { %s1705_s17 = scalar_select %p1402_p1, 1, 0 }
  0x12   : > { %s1706_s18 = scalar_select %p1406_p2, 1, 0 }
  0x13   : > { %p1412_p4 = por %p1402_p1, %p87_p0  ;;  %p1417_p6 = por %p266_p3, %p87_p0 }
  0x14   : > { %p273_p7 = scmp.lt.s32.totalorder %s1305_s14, 3  ;;  %s1307_s22 = smov [#allocation5]  }
  0x15   : > { %s1707_s19 = scalar_select %p1412_p4, 1, 0 }
  0x16   : > { %s1708_s20 = scalar_select %p1417_p6, 1, 0 }
  0x17   : > { %p1422_p8 = pnand %p903_p5, %p273_p7  ;;  %s292_s23 = sshll.u32 %s1307_s22, 4  ;;  %s1426_s23 = int_to_ptr.vmem [resolvable:$true] %s292_s23 }
  0x18   : > { %1709 = sst [smem:[#allocation16_spill]] %s1708_s20  ;;  %s1308_s25 = smov [#allocation7]  }
  0x19   : > { %s1710_s21 = scalar_select %p1422_p8, 1, 0 }
  0x1a   : > { %p1017_p9 = pneg %p1422_p8  ;;  %s305_s26 = sshll.u32 %s1308_s25, 4  ;;  %s1437_s26 = int_to_ptr.vmem [resolvable:$true] %s305_s26 }
  0x1b   : > { %s1309_s27 = smov [#allocation8]   ;;  %s1101_s16 = scalar_lea.hbm %s1685_s2, 512 }
  0x1c   : > { %p1433_p11 = pnand %p1017_p9, %p1402_p1  ;;  %s1439_s28 = sshll.u32 %s1309_s27, 4  ;;  %s322_s28 = int_to_ptr.vmem [resolvable:$true] %s1439_s28 }
  0x1d   : > { %p1102_p12 = scmp.ne.s32.totalorder %s1685_s2, %s1101_s16  ;;  %p1108_p5 = scmp.lt.u32.totalorder %s1101_s16, %s1685_s2 }
  0x1e   : > { %p1449_p13 = pneg %p1433_p11 }
  0x20   : > { %p1104_p0 = pnand %p1449_p13, %p1102_p12 }
  0x22   : > { %p1105_p3 = pneg %p1104_p0 }
  0x24   : > { %p1110_p7 = pnand %p1108_p5, %p1105_p3 }
  0x26   : > { %1113 = shalt.err (!%p1110_p7)
}
  0x27   : > { %s1114_s20 = scalar_lea.vmem %s1426_s23, 512  ;;  %p1122_p1 = scmp.lt.s32.totalorder %s1426_s23, %s1426_s23 }
  0x28   : > { %p1115_p9 = scmp.ne.s32.totalorder %s1426_s23, %s1114_s20  ;;  %p1123_p4 = scmp.lt.s32.totalorder %s1114_s20, %s1114_s20 }
  0x2a   : > { %p1117_p10 = pnand %p1115_p9, %p1449_p13  ;;  %p1124_p12 = por %p1123_p4, %p1122_p1 }
  0x2c   : > { %p1118_p6 = pneg %p1117_p10 }
  0x2e   : > { %p1125_p0 = pnand %p1124_p12, %p1118_p6 }
  0x30   : > { %1128 = shalt.err (!%p1125_p0)
}
  0x31   : > { %s1310_s29 = smov 128   ;;  %s1311_s15 = smov 8  }
  0x32   : > { %1020 = dma.hbm_to_vmem [thread:$0]  (!%p1433_p11), %s1685_s2, 512, %s1426_s23, [#allocation6], %s1310_s29, %s1310_s29, %s1311_s15  }
  0x33   : > { %s1129_s20 = scalar_lea.hbm %s1686_s3, 512 }
  0x34   : > { %p1130_p1 = scmp.ne.s32.totalorder %s1686_s3, %s1129_s20  ;;  %p1136_p10 = scmp.lt.u32.totalorder %s1129_s20, %s1686_s3 }
  0x36   : > { %p1132_p4 = pnand %p1130_p1, %p1449_p13 }
  0x38   : > { %p1133_p6 = pneg %p1132_p4 }
  0x3a   : > { %p1138_p3 = pnand %p1136_p10, %p1133_p6 }
  0x3c   : > { %1141 = shalt.err (!%p1138_p3)
}
  0x3d   : > { %s1142_s23 = scalar_lea.vmem %s1437_s26, 512  ;;  %p1150_p12 = scmp.lt.s32.totalorder %s1437_s26, %s1437_s26 }
  0x3e   : > { %p1143_p5 = scmp.ne.s32.totalorder %s1437_s26, %s1142_s23  ;;  %p1151_p0 = scmp.lt.s32.totalorder %s1142_s23, %s1142_s23 }
  0x40   : > { %p1145_p7 = pnand %p1143_p5, %p1449_p13  ;;  %p1152_p1 = por %p1151_p0, %p1150_p12 }
  0x42   : > { %p1146_p9 = pneg %p1145_p7 }
  0x44   : > { %p1153_p4 = pnand %p1152_p1, %p1146_p9 }
  0x46   : > { %1156 = shalt.err (!%p1153_p4)
}
  0x47   : > { %1023 = dma.hbm_to_vmem [thread:$0]  (!%p1433_p11), %s1686_s3, 512, %s1437_s26, [#allocation6], %s1310_s29, %s1310_s29, %s1311_s15  }
  0x48   : > { %s1157_s16 = scalar_lea.hbm %s1688_s5, 512 }
  0x49   : > { %p1158_p6 = scmp.ne.s32.totalorder %s1688_s5, %s1157_s16  ;;  %p1164_p5 = scmp.lt.u32.totalorder %s1157_s16, %s1688_s5 }
  0x4b   : > { %p1160_p10 = pnand %p1158_p6, %p1449_p13 }
  0x4d   : > { %p1161_p3 = pneg %p1160_p10 }
  0x4f   : > { %p1166_p7 = pnand %p1164_p5, %p1161_p3 }
  0x51   : > { %1169 = shalt.err (!%p1166_p7)
}
  0x52   : > { %s1170_s23 = scalar_lea.vmem %s322_s28, 512  ;;  %p1178_p1 = scmp.lt.s32.totalorder %s322_s28, %s322_s28 }
  0x53   : > { %p1171_p9 = scmp.ne.s32.totalorder %s322_s28, %s1170_s23  ;;  %p1179_p4 = scmp.lt.s32.totalorder %s1170_s23, %s1170_s23 }
  0x55   : > { %p1173_p12 = pnand %p1171_p9, %p1449_p13  ;;  %p1180_p8 = por %p1179_p4, %p1178_p1 }
  0x57   : > { %p1174_p0 = pneg %p1173_p12 }
  0x59   : > { %p1181_p2 = pnand %p1180_p8, %p1174_p0 }
  0x5b   : > { %1184 = shalt.err (!%p1181_p2)
}
  0x5c   : > { %1026 = dma.hbm_to_vmem [thread:$0]  (!%p1433_p11), %s1688_s5, 512, %s322_s28, [#allocation9], %s1310_s29, %s1310_s29, %s1311_s15  }
  0x5d   : > { %s74_s30 = sadd.s32 1, %s1293_s11  ;;  %s36_s24 = sadd.s32 1, %s1301_s13 }
  0x5e   : > { %p81_p2 = scmp.ne.s32.totalorder %s1293_s11, %s1289_s10  ;;  %p37_p8 = scmp.ge.s32.totalorder %s36_s24, 2 }
  0x5f   : > { %p82_p13 = scmp.eq.s32.totalorder %s1305_s14, 0  ;;  %p1713_p6 = scmp.ne.s32.totalorder %s1706_s18, 0 }
  0x60   : > { %p1038_p3 = scmp.lt.s32.totalorder %s1305_s14, 2  ;;  %s1733_s24 = smov (%p37_p8, %s36_s24), 0 }
  0x61   : > { %p1528_p10 = por %p1713_p6, %p81_p2  ;;  %p83_p5 = por %p82_p13, %p81_p2 }
  0x62   : > { %s344_s8 = sand.u32 1, %s1293_s11   ;;  %s69_s9 = ssub.s32 %s1301_s13, %s1733_s24 }
  0x63   : > { %p72_p7 = scmp.eq.s32.totalorder %s69_s9, 0  ;;  %s909_s28 = sshll.u32 %s344_s8, 3 }
  0x64   : > { %s910_s29 = sshll.u32 %s1301_s13, 7  ;;  %s348_s25 = scalar_lea.vmem [#allocation2], %s909_s28 }
  0x65   : > { %s1540_s15 = scalar_select %p72_p7, %s1293_s11, %s74_s30  }
  0x66   : > { %s1545_s18 = scalar_lea.hbm %s1684_s1, %s910_s29  ;;  %s356_s27 = sshll.u32 %s348_s25, 4  ;;  %s1547_s27 = int_to_ptr.vmem [resolvable:$true] %s356_s27 }
  0x67   : > { %p1551_p11 = pnand %p1038_p3, %p83_p5  ;;  %s345_s23 = scalar_lea.sflag [#allocation3], %s344_s8 }
  0x68   : > { %s1185_s26 = scalar_lea.hbm %s1545_s18, 128  ;;  %s1190_s9 = scalar_lea.hbm %s1684_s1, 256 }
  0x69   : > { %p1186_p9 = scmp.ne.s32.totalorder %s1545_s18, %s1185_s26  ;;  %p1187_p12 = pneg %p1551_p11 }
  0x6a   : > { %p1191_p4 = scmp.lt.u32.totalorder %s1545_s18, %s1684_s1  ;;  %p1192_p2 = scmp.lt.u32.totalorder %s1190_s9, %s1185_s26 }
  0x6b   : > { %p1188_p0 = pnand %p1187_p12, %p1186_p9  ;;  %p1194_p13 = scmp.lt.u32.totalorder %s1185_s26, %s1545_s18 }
  0x6c   : > { %p1193_p8 = por %p1192_p2, %p1191_p4 }
  0x6d   : > { %p1189_p1 = pneg %p1188_p0 }
  0x6e   : > { %p1195_p6 = por %p1194_p13, %p1193_p8 }
  0x70   : > { %p1196_p3 = pnand %p1195_p6, %p1189_p1 }
  0x72   : > { %1199 = shalt.err (!%p1196_p3)
}
  0x73   : > { %s1200_s8 = scalar_lea.vmem %s1547_s27, 128  ;;  %s1312_s16 = smov [#allocation2]  }
  0x74   : > { %p1201_p5 = scmp.ne.s32.totalorder %s1547_s27, %s1200_s8  ;;  %s1205_s22 = sshll.u32 %s1312_s16, 4  ;;  %s1206_s22 = int_to_ptr.vmem [resolvable:$false] %s1205_s22 }
  0x75   : > { %s1207_s25 = scalar_lea.vmem %s1206_s22, 256  ;;  %p1208_p0 = scmp.lt.s32.totalorder %s1547_s27, %s1206_s22 }
  0x76   : > { %p1203_p7 = pnand %p1201_p5, %p1187_p12  ;;  %p1209_p4 = scmp.lt.s32.totalorder %s1207_s25, %s1200_s8 }
  0x78   : > { %p1204_p9 = pneg %p1203_p7  ;;  %p1210_p2 = por %p1209_p4, %p1208_p0 }
  0x7a   : > { %p1211_p8 = pnand %p1210_p2, %p1204_p9 }
  0x7c   : > { %1214 = shalt.err (!%p1211_p8)
}
  0x7d   : > { %1030 = dma.hbm_to_vmem [thread:$0]  (!%p1551_p11), %s1545_s18, 128, %s1547_s27, %s345_s23  }
  0x7e   : > { %p1716_p1 = scmp.ne.s32.totalorder %s1710_s21, 0 }
  0x7f   : > { %s1583_s26 = sand.u32 (!%p1716_p1), 1, %s1289_s10   ;;  %p1717_p12 = scmp.ne.s32.totalorder (!%p1716_p1), %s1707_s19, 0 }
  0x80   : > { %365 = sbr.rel (%p1716_p1) target bundleno = 818 (0x332), region = 56  ;;  %s912_s6 = sshll.u32 (!%p1716_p1), %s1583_s26, 3 }
  0x81   : > { %s368_s30 = scalar_lea.sflag (!%p1716_p1), [#allocation3], %s1583_s26  ;;  %s1589_s9 = scalar_lea.vmem (!%p1716_p1), [#allocation2], %s912_s6 }
  0x87   : > { %1268 = dma.done.wait (%p1717_p12), %s368_s30, 128  }
  0x88   : > { %1270 = vsyncadd (%p1717_p12), %s368_s30, 4294967168  ;;  %p1718_p11 = scmp.ne.s32.totalorder %s1705_s17, 0 }
  0x8a   : > { %1272 = dma.done.wait (%p1718_p11), [#allocation6], 1024  }
  0x8b   : > { %1274 = vsyncadd (%p1718_p11), [#allocation6], 4294966272 }
  0x8c   : > { %1276 = dma.done.wait (%p1718_p11), [#allocation9], 512  }
  0x8d   : > { %1278 = vsyncadd (%p1718_p11), [#allocation9], 4294966784  ;;  %v1313_v0 = vmov 0.0|0.0   ;;  %vm1314_vm0 = vmmov 0   ;;  %v1315_v1 = vmov 0.0   ;;  %v432_v2 = vld [vmem:[#allocation7] sm:$0xff] }
  0x8e   : > { %983 = vmatprep.subr.bf16.mxu0 %v1313_v0  ;;  %989 = vmatprep.subr.bf16.mxu1 %v1313_v0  ;;  %v433_v3 = vld [vmem:[#allocation7 + $0x8] sm:$0xff]  ;;  %v428_v4 = vld [vmem:[#allocation5] sm:$0xff]  ;;  %v434_v7 = vld [vmem:[#allocation7 + $0x10] sm:$0xff]  ;;  %vm436_vm1 = vcmask 261120   ;;  %s1719_s23 = sld [smem:[#allocation19_spill]]  ;;  %v1316_v31 = vmov 0  }
  0x8f   : > { %953 = vmatprep.mubr.msk.f32.mxu0 %vm1314_vm0, %v1315_v1  ;;  %964 = vmatprep.mubr.msk.f32.mxu1 %vm1314_vm0, %v1315_v1  ;;  %v984_v5 = vpack.c.bf16 %v433_v3, %v432_v2  ;;  %v429_v6 = vld [vmem:[#allocation5 + $0x8] sm:$0xff]  ;;  %v435_v8 = vld [vmem:[#allocation7 + $0x18] sm:$0xff]  ;;  %v430_v10 = vld [vmem:[#allocation5 + $0x10] sm:$0xff]  ;;  %s1720_s8 = sld [smem:[#allocation17_spill]]  ;;  %s1721_s25 = sld [smem:[#allocation18_spill]]  ;;  %vm760_vm2 = vcmask 64512  }
  0x90   : > { %v990_v9 = vpack.c.bf16 %v429_v6, %v428_v4  ;;  %v431_v11 = vld [vmem:[#allocation5 + $0x18] sm:$0xff]  ;;  %v987_v12 = vpack.c.bf16 %v435_v8, %v434_v7  ;;  %v426_v15 = vld [vmem:[%s1683_s0] sm:$0xff]  ;;  %v592_v16 = vld [vmem:[#allocation8] sm:$0xff]  ;;  %1100 = vset.pattern.permute.xlu0 %v1316_v31  ;;  %s925_s30 = sshll.u32 %s1297_s12, 7  ;;  %s1722_s18 = sld [smem:[#allocation20_spill]] }
  0x91   : > { %985 = vmatpush3.bf16.msra.mxu0 %v984_v5  ;;  %v993_v13 = vpack.c.bf16 %v431_v11, %v430_v10  ;;  %v427_v14 = vld [vmem:[%s1589_s9] sm:$0xff]  ;;  %v593_v17 = vld [vmem:[#allocation8 + $0x8] sm:$0xff]  ;;  %s421_s9 = scalar_lea.vmem [#allocation10], %s912_s6  ;;  %s763_s20 = scalar_lea.sflag [#allocation4], %s1583_s26 }
  0x92   : > { %991 = vmatpush3.bf16.msra.mxu1 %v990_v9  ;;  %986 = vmatprep.subr.bf16.mxu0 %v1313_v0  ;;  %v996_v18 = vpack.c.bf16 %v593_v17, %v592_v16  ;;  %v594_v19 = vld [vmem:[#allocation8 + $0x10] sm:$0xff]  ;;  %v595_v20 = vld [vmem:[#allocation8 + $0x18] sm:$0xff]  ;;  %s777_s17 = sshll.u32 %s421_s9, 4  ;;  %s1317_s6 = smov [#allocation10]   ;;  %s1636_s17 = int_to_ptr.vmem [resolvable:$true] %s777_s17 }
  0x93   : > { %992 = vmatprep.subr.bf16.mxu1 %v1313_v0  ;;  %v999_v21 = vpack.c.bf16 %v595_v20, %v594_v19  ;;  %v919_v24 = vld [vmem:[%s1687_s4] ss:$0 sm:$0xff]  ;;  %s1215_s12 = scalar_lea.vmem %s1636_s17, 128 }
  0x94   : > { %v678_v30 = vld [vmem:[%s1719_s23] sm:$0xff]  ;;  %p1216_p13 = scmp.ne.s32.totalorder %s1636_s17, %s1215_s12  ;;  %s1219_s23 = sshll.u32 %s1317_s6, 4  ;;  %s1220_s23 = int_to_ptr.vmem [resolvable:$false] %s1219_s23 }
  0x95   : > { %988 = vmatpush3.bf16.msra.mxu0 %v987_v12  ;;  %681 = vperm.xlu0 %1100, %v678_v30   ;;  %v920_v32 = vld [vmem:[%s1720_s8] ss:$0 sm:$0xff]  ;;  %s1221_s28 = scalar_lea.vmem %s1220_s23, 256  ;;  %p1222_p5 = scmp.lt.s32.totalorder %s1636_s17, %s1220_s23 }
  0x96   : > { %994 = vmatpush3.bf16.msra.mxu1 %v993_v13  ;;  %995 = vmatprep.subr.bf16.mxu0 %v1313_v0  ;;  %v677_v37 = vld [vmem:[%s1721_s25] sm:$0xff]  ;;  %s1634_s27 = scalar_lea.hbm %s1722_s18, %s925_s30  ;;  %p1217_p6 = pnand %p1216_p13, %p1528_p10 }
  0x97   : > { %978 = vmatprep.subr.mxu1 %v1315_v1  ;;  %p1223_p7 = scmp.lt.s32.totalorder %s1221_s28, %s1215_s12 }
  0x98   : > { %954 = vmatmul.mubr.msk.f32.vlgmr.msra.gmra.mrb[0].mxu0 %vm436_vm1, %v427_v14  ;;  %p1218_p3 = pneg %p1217_p6 }
  0x99   : > { %965 = vmatmul.mubr.msk.f32.vlgmr.msra.gmra.mrb[0].mxu1 %vm436_vm1, %v426_v15  ;;  %975 = vmatprep.mubr.msk.f32.mxu0 %vm1314_vm0, %v1315_v1  ;;  %p1224_p9 = por %p1223_p7, %p1222_p5 }
  0x9a   : > { %980 = vmatprep.mubr.msk.f32.mxu1 %vm1314_vm0, %v1315_v1  ;;  %997 = vmatpush3.bf16.msra.mxu0 %v996_v18 }
  0x9b   : > { %998 = vmatprep.subr.bf16.mxu0 %v1313_v0  ;;  %p1225_p0 = pnand %p1224_p9, %p1218_p3 }
  0x9e   : > { %1000 = vmatpush3.bf16.msra.mxu0 %v999_v21 }
 0x114   : > { %v682_v38 = vpop.permute.xlu0 %681 }
 0x16b   : > { %v506_v22 = vpop.f32.mrb[0].mxu0 }
 0x16c   : > { %v579_v23 = vpop.f32.mrb[0].mxu1  ;;  %v955_v25 = vpop.f32.mrb[1].mxu0 }
 0x16d   : > { %v580_v26 = vadd.f32 %v579_v23, %v506_v22  ;;  %v966_v27 = vpop.f32.mrb[1].mxu1 }
 0x16f   : > { %v590_v28 = vadd.f32 %v919_v24, %v580_v26 }
 0x171   : > { %v591_v29 = vmax.f32 %v590_v28, 0.0 }
 0x173   : > { %976 = vmatmul.mubr.msk.f32.vlgmr.msra.gmra.mrb[2].mxu0 %vm436_vm1, %v591_v29 }
 0x246   : > { %v672_v33 = vpop.f32.mrb[2].mxu0 }
 0x247   : > { %v673_v34 = vadd.f32 %v920_v32, %v672_v33  ;;  %v977_v35 = vpop.f32.mrb[3].mxu0 }
 0x249   : > { %v676_v36 = vmax.f32 %v673_v34, 0.0 }
 0x24b   : > { %979 = vmatpush3.xpose.msk.msra.mxu1 %vm436_vm1, %v676_v36 }
 0x24e   : > { %981 = vmatmul.mubr.msk.f32.vlgmr.msra.gmra.mrb[2].mxu1 %vm436_vm1, %v677_v37 }
 0x321   : > { %v756_v39 = vpop.f32.mrb[2].mxu1 }
 0x322   : > { %v757_v40 = vadd.f32 %v756_v39, %v682_v38  ;;  %v982_v41 = vpop.f32.mrb[3].mxu1 }
 0x324   : > { %761 = vst.msk [vmem:[%s421_s9] sm:$0xff] %vm760_vm2, %v757_v40 }
 0x325   : > { %1228 = shalt.err (!%p1225_p0)
}
 0x326   : > { %s1229_s26 = scalar_lea.hbm %s1634_s27, 128  ;;  %s1233_s16 = scalar_lea.hbm %s1722_s18, 256 }
 0x327   : > { %p1230_p4 = scmp.ne.s32.totalorder %s1634_s27, %s1229_s26  ;;  %p1234_p1 = scmp.lt.u32.totalorder %s1634_s27, %s1722_s18 }
 0x328   : > { %p1235_p12 = scmp.lt.u32.totalorder %s1233_s16, %s1229_s26  ;;  %p1237_p13 = scmp.lt.u32.totalorder %s1229_s26, %s1634_s27 }
 0x329   : > { %p1231_p2 = pnand %p1230_p4, %p1528_p10 }
 0x32a   : > { %p1236_p11 = por %p1235_p12, %p1234_p1 }
 0x32b   : > { %p1232_p8 = pneg %p1231_p2 }
 0x32c   : > { %p1238_p6 = por %p1237_p13, %p1236_p11 }
 0x32e   : > { %p1239_p3 = pnand %p1238_p6, %p1232_p8 }
 0x330   : > { %1242 = shalt.err (!%p1239_p3)
}
 0x331   : > { %1015 = dma.vmem_to_hbm [thread:$0]  (%p1528_p10), %s1636_s17, 128, %s1634_s27, %s763_s20  }
 0x332 PF: > { %s1723_s30 = sld [smem:[#allocation15_spill]]  ;;  %s1724_s9 = sld [smem:[#allocation16_spill]] }
 0x333   : > { %p1726_p7 = scmp.ge.s32.totalorder %s1305_s14, 2 }
 0x338   : > { %s789_s19 = sand.u32 1, %s1723_s30   ;;  %p1725_p5 = scmp.ne.s32.totalorder %s1724_s9, 0 }
 0x339   : > { %s790_s21 = scalar_lea.sflag [#allocation4], %s789_s19 }
 0x33a   : > { %p1032_p9 = pnand %p1726_p7, %p1725_p5 }
 0x33c   : > { %1280 = dma.done.wait (!%p1032_p9), %s790_s21, 128  }
 0x33d   : > { %1282 = vsyncadd (!%p1032_p9), %s790_s21, 4294967168  ;;  %s27_s14 = sadd.s32 1, %s1305_s14   ;;  %s1727_s30 = smov %s1289_s10 }
 0x33e   : > { %p24_p0 = scmp.ge.s32.totalorder %s27_s14, 4   ;;  %s1728_s10 = smov %s1293_s11 }
 0x33f   : > { %s1729_s11 = smov %s1540_s15  ;;  %s1730_s12 = smov %s1301_s13 }
 0x340   : > { %s1731_s13 = smov %s1733_s24  ;;  %26 = sbr.rel (!%p24_p0) target bundleno = 13 (0xd), region = 116 }
 0x347   :  { %795 = vsyncpa [#allocation3], 1 }
 0x348   :  { %797 = vsyncpa [#allocation3 + $0x1], 1 }
 0x349   :  { %798 = vsyncpa [#allocation6], 1 }
 0x34a   :  { %799 = vsyncpa [#allocation9], 1 }
 0x34b   :  { %800 = vsyncpa [#allocation4], 1 }
 0x34c   :  { %802 = vsyncpa [#allocation4 + $0x1], 1 }

</bundles_post_ra>
